<compile_context>
chip_gen: v5e
topology: v5e:2x2
jax: 0.10.0
libtpu: 0.0.40
codegen_flags: <defaults>
</compile_context>

<pallas_src>
import functools

import jax
import jax.numpy as jnp
from jax.experimental import pallas as pl
from jax.experimental.pallas import tpu as pltpu


def _round_up(x, m):
    return ((x + m - 1) // m) * m


def _largest_divisor_leq(n, cap):
    for d in range(min(n, cap), 0, -1):
        if n % d == 0:
            return d
    return 1


def _pick_tm(m):
    """Pick an M tile that (a) is a multiple of 8, (b) usually divides M exactly."""
    ms = _round_up(m, 8)
    if ms <= 512:
        return ms
    for tm in (1024, 768, 512, 384, 256, 128, 64, 8):
        if ms % tm == 0 and ms // tm >= 2:
            return tm
    return 512


# ---------------------------------------------------------------------------
# Fused matmul kernel: out = act(a @ b + bias), optionally also emitting the
# per-channel sum / sum-of-squares of (a @ b + bias) for BatchNorm statistics.
# MXU inputs are bf16; accumulator, stats and epilogue are f32.
# ---------------------------------------------------------------------------

def _matmul_kernel(a_ref, b_ref, bias_ref, *refs,
                   activation, with_stats, tm, m_valid, masked):
    if with_stats:
        o_ref, sum_ref, sq_ref, acc_ref = refs
    else:
        o_ref, acc_ref = refs

    @pl.when(pl.program_id(2) == 0)
    def _():
        acc_ref[...] = jnp.zeros_like(acc_ref)

    acc_ref[...] += jnp.dot(a_ref[...], b_ref[...],
                            preferred_element_type=jnp.float32)

    @pl.when(pl.program_id(2) == pl.num_programs(2) - 1)
    def _():
        y = acc_ref[...] + bias_ref[...]
        if with_stats:
            ys = y
            if masked:  # zero out padded rows so they don't pollute BN statistics
                rows = (jax.lax.broadcasted_iota(jnp.int32, y.shape, 0)
                        + pl.program_id(0) * tm)
                ys = jnp.where(rows < m_valid, y, 0.0)
            sum_ref[...] = jnp.sum(ys, axis=0)[None, None, :]
            sq_ref[...] = jnp.sum(ys * ys, axis=0)[None, None, :]
        if activation == "relu":
            y = jnp.maximum(y, 0.0)
        elif activation == "tanh":
            y = jnp.tanh(y)
        o_ref[...] = y.astype(o_ref.dtype)


def matmul_fused(a, b, bias, activation="none", with_stats=False,
                 out_dtype=jnp.bfloat16):
    """act(a @ b + bias).  a:(M,K) b:(K,N) bias:(N,).  bf16 MXU, f32 epilogue."""
    M, K = a.shape
    K2, N = b.shape
    assert K == K2

    tm = _pick_tm(M)
    Mp = _round_up(M, tm)

    if N < 128:                       # full-dim lane exception: no N padding / slicing
        tn, Np = N, N
    else:
        Np = _round_up(N, 128)
        tn = 256 if Np % 256 == 0 else 128

    Kp = _round_up(K, 128)
    tk = Kp                           # single K step whenever it fits VMEM
    if tk > 8192:
        for cand in (4096, 2048, 1024, 512, 256, 128):
            if Kp % cand == 0:
                tk = cand
                break

    a = a.astype(jnp.bfloat16)
    b = b.astype(jnp.bfloat16)
    if Mp > M or Kp > K:
        a = jnp.pad(a, ((0, Mp - M), (0, Kp - K)))
    if Kp > K or Np > N:
        b = jnp.pad(b, ((0, Kp - K), (0, Np - N)))
    bias = bias.astype(jnp.float32).reshape(1, N)
    if Np > N:
        bias = jnp.pad(bias, ((0, 0), (0, Np - N)))

    n_i, n_j, n_k = Mp // tm, Np // tn, Kp // tk

    out_shapes = [jax.ShapeDtypeStruct((Mp, Np), out_dtype)]
    out_specs = [pl.BlockSpec((tm, tn), lambda i, j, k: (i, j))]
    if with_stats:
        out_shapes += [jax.ShapeDtypeStruct((n_i, 1, Np), jnp.float32)] * 2
        out_specs += [pl.BlockSpec((1, 1, tn), lambda i, j, k: (i, 0, j))] * 2

    kernel = functools.partial(
        _matmul_kernel, activation=activation, with_stats=with_stats,
        tm=tm, m_valid=M, masked=(Mp > M))

    res = pl.pallas_call(
        kernel,
        out_shape=tuple(out_shapes),
        grid_spec=pltpu.PrefetchScalarGridSpec(
            num_scalar_prefetch=0,
            grid=(n_i, n_j, n_k),
            in_specs=[
                pl.BlockSpec((tm, tk), lambda i, j, k: (i, k)),
                pl.BlockSpec((tk, tn), lambda i, j, k: (k, j)),
                pl.BlockSpec((1, tn), lambda i, j, k: (0, j)),
            ],
            out_specs=tuple(out_specs),
            scratch_shapes=[pltpu.VMEM((tm, tn), jnp.float32)],
        ),
        compiler_params=pltpu.CompilerParams(
            dimension_semantics=("parallel", "parallel", "arbitrary"),
            vmem_limit_bytes=32 * 1024 * 1024),
    )(a, b, bias)

    out = res[0][:M, :N]
    if with_stats:
        s = jnp.sum(res[1][:, 0, :N], axis=0)
        sq = jnp.sum(res[2][:, 0, :N], axis=0)
        return out, s, sq
    return out


# ---------------------------------------------------------------------------
# Fused BatchNorm-apply + ReLU + MaxPool3d(kernel=(1,2,2), stride=(1,2,2)).
# Input is viewed (zero-copy) as (B*D*(H/2), 2, W/2, 2*C): one read, one write.
# The W-pair pooling is a max of the two C-wide lane halves (lane-dense loads).
# ---------------------------------------------------------------------------

def _bn_relu_pool_kernel(x_ref, scale_ref, shift_ref, o_ref):
    c = o_ref.shape[-1]
    x = x_ref[...].astype(jnp.float32)                       # (tr, 2, W/2, 2C)
    y = jnp.maximum(x * scale_ref[...] + shift_ref[...], 0.0)
    y = jnp.maximum(y[:, 0], y[:, 1])                        # pool over H pair
    o_ref[...] = jnp.maximum(y[..., :c], y[..., c:]).astype(o_ref.dtype)  # W pair


def bn_relu_maxpool_1x2x2(x, scale, shift):
    B, D, H, W, C = x.shape
    R, Wh = B * D * (H // 2), W // 2
    xr = x.reshape(R, 2, Wh, 2 * C)                          # contiguous, no copy
    tr = _largest_divisor_leq(R, 64)
    sc = jnp.tile(scale.astype(jnp.float32).reshape(1, C), (1, 2))
    sh = jnp.tile(shift.astype(jnp.float32).reshape(1, C), (1, 2))
    out = pl.pallas_call(
        _bn_relu_pool_kernel,
        out_shape=jax.ShapeDtypeStruct((R, Wh, C), x.dtype),
        grid_spec=pltpu.PrefetchScalarGridSpec(
            num_scalar_prefetch=0,
            grid=(R // tr,),
            in_specs=[pl.BlockSpec((tr, 2, Wh, 2 * C), lambda i: (i, 0, 0, 0)),
                      pl.BlockSpec((1, 2 * C), lambda i: (0, 0)),
                      pl.BlockSpec((1, 2 * C), lambda i: (0, 0))],
            out_specs=pl.BlockSpec((tr, Wh, C), lambda i: (i, 0, 0)),
        ),
        compiler_params=pltpu.CompilerParams(
            dimension_semantics=("parallel",),
            vmem_limit_bytes=32 * 1024 * 1024),
    )(xr, sc, sh)
    return out.reshape(B, D, H // 2, W // 2, C)


# ---------------------------------------------------------------------------
# Conv3d via im2col (bf16, K already padded to a multiple of 128) + fused matmul.
# ---------------------------------------------------------------------------

def _extract_patches_3d(x, ksize, stride, pad, k_pad_to=None):
    kd, kh, kw = ksize
    sd, sh, sw = stride
    pd, ph, pw = pad
    x = jnp.pad(x, ((0, 0), (pd, pd), (ph, ph), (pw, pw), (0, 0)))
    B, D, H, W, C = x.shape
    Do = (D - kd) // sd + 1
    Ho = (H - kh) // sh + 1
    Wo = (W - kw) // sw + 1
    slices = []
    for dz in range(kd):
        for dy in range(kh):
            for dx in range(kw):
                slices.append(x[:, dz:dz + Do * sd:sd,
                                dy:dy + Ho * sh:sh,
                                dx:dx + Wo * sw:sw, :])
    K = kd * kh * kw * C
    if k_pad_to is not None and k_pad_to > K:
        slices.append(jnp.zeros((B, Do, Ho, Wo, k_pad_to - K), x.dtype))
    return jnp.concatenate(slices, axis=-1), (Do, Ho, Wo)


def conv3d_pallas(x, w, b, ksize, stride, pad, activation="none", with_stats=False):
    """x: NDHWC (bf16), w: PyTorch Conv3d layout (Cout, Cin, kd, kh, kw)."""
    Cout, Cin = w.shape[0], w.shape[1]
    K = Cin * ksize[0] * ksize[1] * ksize[2]
    Kp = _round_up(K, 128)
    w_mat = jnp.transpose(w, (2, 3, 4, 1, 0)).reshape(K, Cout)
    if Kp > K:
        w_mat = jnp.pad(w_mat, ((0, Kp - K), (0, 0)))
    patches, (Do, Ho, Wo) = _extract_patches_3d(
        x.astype(jnp.bfloat16), ksize, stride, pad, k_pad_to=Kp)
    B = x.shape[0]
    a = patches.reshape(-1, Kp)
    res = matmul_fused(a, w_mat, b, activation=activation, with_stats=with_stats)
    if with_stats:
        out, s, sq = res
        return out.reshape(B, Do, Ho, Wo, Cout), s, sq
    return res.reshape(B, Do, Ho, Wo, Cout)


def _bn_scale_shift(s, sq, count, gamma, beta, eps=1e-5):
    # TODO(synk): single-pass E[x^2]-E[x]^2 variance (f32); switch to a two-pass /
    # Welford reduction if bit-closeness to PyTorch's BatchNorm is required.
    mean = s / count
    var = jnp.maximum(sq / count - mean * mean, 0.0)
    scale = gamma.astype(jnp.float32) / jnp.sqrt(var + eps)
    shift = beta.astype(jnp.float32) - mean * scale
    return scale, shift


# ---------------------------------------------------------------------------
# EarlyFusion forward + deterministic parameter init
# ---------------------------------------------------------------------------

def init_params(key, input_channels, input_seq_len, embedding_sz):
    c1, c2, c3 = 64, 128, 256

    def conv_w(k, cout, cin, kd, kh, kw):
        fan_in = cin * kd * kh * kw
        return jax.random.normal(k, (cout, cin, kd, kh, kw), jnp.float32) / jnp.sqrt(fan_in)

    keys = jax.random.split(key, 12)
    p = {
        "w1": conv_w(keys[0], c1, input_channels, 3, 3, 3),
        "b1": 0.01 * jax.random.normal(keys[1], (c1,), jnp.float32),
        "g1": jnp.ones((c1,), jnp.float32), "beta1": jnp.zeros((c1,), jnp.float32),
        "w2": conv_w(keys[2], c2, c1, 1, 3, 3),
        "b2": 0.01 * jax.random.normal(keys[3], (c2,), jnp.float32),
        "g2": jnp.ones((c2,), jnp.float32), "beta2": jnp.zeros((c2,), jnp.float32),
        "w3a": conv_w(keys[4], c3, c2, 1, 3, 3),
        "b3a": 0.01 * jax.random.normal(keys[5], (c3,), jnp.float32),
        "w3b": conv_w(keys[6], c3, c3, 1, 3, 3),
        "b3b": 0.01 * jax.random.normal(keys[7], (c3,), jnp.float32),
        "w3c": conv_w(keys[8], c3, c3, 1, 3, 3),
        "b3c": 0.01 * jax.random.normal(keys[9], (c3,), jnp.float32),
    }
    embed_in = c3 * (input_seq_len + 2) * 4
    # Stored pre-transposed: (embed_in, embedding_sz) -> no runtime transpose copy.
    p["w_embed"] = jax.random.normal(keys[10], (embed_in, embedding_sz),
                                     jnp.float32) / jnp.sqrt(embed_in)
    p["b_embed"] = 0.01 * jax.random.normal(keys[11], (embedding_sz,), jnp.float32)
    return p


def early_fusion_forward(params, x_ncdhw):
    # NCDHW (PyTorch) -> NDHWC (kernel layout), bf16 inter-layer activations.
    x = jnp.transpose(x_ncdhw, (0, 2, 3, 4, 1)).astype(jnp.bfloat16)

    def conv_bn_relu_pool(h, w, b, g, beta, ksize, stride, pad):
        y, s, sq = conv3d_pallas(h, w, b, ksize, stride, pad, with_stats=True)
        count = y.shape[0] * y.shape[1] * y.shape[2] * y.shape[3]
        scale, shift = _bn_scale_shift(s, sq, count, g, beta)
        return bn_relu_maxpool_1x2x2(y, scale, shift)

    y = conv_bn_relu_pool(x, params["w1"], params["b1"], params["g1"], params["beta1"],
                          (3, 3, 3), (1, 1, 1), (1, 1, 1))
    y = conv_bn_relu_pool(y, params["w2"], params["b2"], params["g2"], params["beta2"],
                          (1, 3, 3), (1, 1, 1), (1, 1, 1))

    y = conv3d_pallas(y, params["w3a"], params["b3a"], (1, 3, 3), (1, 2, 2), (0, 1, 1), "relu")
    y = conv3d_pallas(y, params["w3b"], params["b3b"], (1, 3, 3), (1, 1, 1), (0, 0, 0), "relu")
    y = conv3d_pallas(y, params["w3c"], params["b3c"], (1, 3, 3), (1, 1, 1), (0, 0, 0), "relu")

    # Final maxpool reuses the fused kernel with identity scale/shift (ReLU is idempotent).
    C3 = y.shape[-1]
    y = bn_relu_maxpool_1x2x2(y, jnp.ones((C3,), jnp.float32), jnp.zeros((C3,), jnp.float32))

    # Flatten in PyTorch NCDHW order to match x.view(-1, C*D*H*W).
    B = y.shape[0]
    flat = jnp.transpose(y, (0, 4, 1, 2, 3)).reshape(B, -1)
    # Linear + tanh, single K tile / single grid step.
    return matmul_fused(flat, params["w_embed"], params["b_embed"],
                        activation="tanh", out_dtype=jnp.float32)


if __name__ == "__main__":
    B, C_in, T, S = 2, 3, 4, 64          # input_sz must be 64 per the module's assert
    embedding_sz = 128
    key = jax.random.PRNGKey(0)
    kx, kp = jax.random.split(key)
    x = jax.random.normal(kx, (B, C_in, T, S, S), jnp.float32)   # NCDHW like PyTorch
    params = init_params(kp, C_in, T, embedding_sz)

    fwd = jax.jit(early_fusion_forward)
    out = jax.block_until_ready(fwd(params, x))

    assert out.shape == (B, embedding_sz), out.shape
    assert bool(jnp.all(jnp.isfinite(out)))
    assert bool(jnp.all(jnp.abs(out) <= 1.0 + 1e-6))   # tanh range
    print("KERNEL_OK")
</pallas_src>

<mosaic_0001>
module attributes {stable_mosaic.version = 11 : i64} {
  func.func @_matmul_kernel(%arg0: i32, %arg1: i32, %arg2: i32, %arg3: memref<1024x128xbf16, #tpu.memory_space<vmem>>, %arg4: memref<128x64xbf16, #tpu.memory_space<vmem>>, %arg5: memref<1x64xf32, #tpu.memory_space<vmem>>, %arg6: memref<1024x64xbf16, #tpu.memory_space<vmem>>, %arg7: memref<1x1x64xf32, #tpu.memory_space<vmem>>, %arg8: memref<1x1x64xf32, #tpu.memory_space<vmem>>, %arg9: memref<1024x64xf32, #tpu.memory_space<vmem>>) attributes {dimension_semantics = [#tpu.dimension_semantics<parallel>, #tpu.dimension_semantics<parallel>, #tpu.dimension_semantics<arbitrary>], iteration_bounds = array<i64: 32, 1, 1>, scalar_prefetch = 0 : i64, scratch_operands = 1 : i64, tpu.core_type = #tpu.core_type<tc>, window_params = [{transform_indices = @transform_0, window_bounds = array<i64: 1024, 128>}, {transform_indices = @transform_1, window_bounds = array<i64: 128, 64>}, {transform_indices = @transform_2, window_bounds = array<i64: 1, 64>}, {transform_indices = @transform_3, window_bounds = array<i64: 1024, 64>}, {transform_indices = @transform_4, window_bounds = array<i64: 1, 1, 64>}, {transform_indices = @transform_5, window_bounds = array<i64: 1, 1, 64>}]} {
    %c0_i32 = arith.constant 0 : i32
    %0 = arith.cmpi eq, %arg2, %c0_i32 : i32
    %1 = arith.extui %0 : i1 to i32
    %c0_i32_0 = arith.constant 0 : i32
    %2 = arith.cmpi ne, %1, %c0_i32_0 : i32
    scf.if %2 {
      %cst_10 = arith.constant 0.000000e+00 : f32
      %12 = vector.broadcast %cst_10 : f32 to vector<1024x64xf32>
      %c0_11 = arith.constant 0 : index
      %c0_12 = arith.constant 0 : index
      %13 = vector.load %arg9[%c0_11, %c0_12] : memref<1024x64xf32, #tpu.memory_space<vmem>>, vector<1024x64xf32>
      tpu.vector_store %arg9[%c0_11, %c0_12], %12 {strides = array<i32>} : memref<1024x64xf32, #tpu.memory_space<vmem>>, vector<1024x64xf32>,
    } else {
    }
    %c0 = arith.constant 0 : index
    %c0_1 = arith.constant 0 : index
    %3 = vector.load %arg9[%c0, %c0_1] : memref<1024x64xf32, #tpu.memory_space<vmem>>, vector<1024x64xf32>
    %c0_2 = arith.constant 0 : index
    %c0_3 = arith.constant 0 : index
    %4 = vector.load %arg3[%c0_2, %c0_3] : memref<1024x128xbf16, #tpu.memory_space<vmem>>, vector<1024x128xbf16>
    %c0_4 = arith.constant 0 : index
    %c0_5 = arith.constant 0 : index
    %5 = vector.load %arg4[%c0_4, %c0_5] : memref<128x64xbf16, #tpu.memory_space<vmem>>, vector<128x64xbf16>
    %cst = arith.constant dense<0.000000e+00> : vector<1024x64xf32>
    %6 = tpu.matmul %4, %5, %cst {dimension_numbers = #tpu.dot_dimension_numbers<[1], [0], [0], [1], [0, 0, 1, 1], [], []>} : vector<1024x128xbf16>, vector<128x64xbf16>, vector<1024x64xf32> -> vector<1024x64xf32>
    %7 = arith.addf %3, %6 : vector<1024x64xf32>
    %c0_6 = arith.constant 0 : index
    %c0_7 = arith.constant 0 : index
    %8 = vector.load %arg9[%c0_6, %c0_7] : memref<1024x64xf32, #tpu.memory_space<vmem>>, vector<1024x64xf32>
    tpu.vector_store %arg9[%c0_6, %c0_7], %7 {strides = array<i32>} : memref<1024x64xf32, #tpu.memory_space<vmem>>, vector<1024x64xf32>,
    %c0_i32_8 = arith.constant 0 : i32
    %9 = arith.cmpi eq, %arg2, %c0_i32_8 : i32
    %10 = arith.extui %9 : i1 to i32
    %c0_i32_9 = arith.constant 0 : i32
    %11 = arith.cmpi ne, %10, %c0_i32_9 : i32
    scf.if %11 {
      %c0_10 = arith.constant 0 : index
      %c0_11 = arith.constant 0 : index
      %12 = vector.load %arg9[%c0_10, %c0_11] : memref<1024x64xf32, #tpu.memory_space<vmem>>, vector<1024x64xf32>
      %c0_12 = arith.constant 0 : index
      %c0_13 = arith.constant 0 : index
      %13 = vector.load %arg5[%c0_12, %c0_13] : memref<1x64xf32, #tpu.memory_space<vmem>>, vector<1x64xf32>
      %14 = vector.broadcast %13 : vector<1x64xf32> to vector<1024x64xf32>
      %15 = arith.addf %12, %14 : vector<1024x64xf32>
      %cst_14 = arith.constant dense<0.000000e+00> : vector<64xf32>
      %16 = vector.multi_reduction <add>, %15, %cst_14 [0] : vector<1024x64xf32> to vector<64xf32>
      %17 = vector.shape_cast %16 : vector<64xf32> to vector<1x1x64xf32>
      %c0_15 = arith.constant 0 : index
      %c0_16 = arith.constant 0 : index
      %c0_17 = arith.constant 0 : index
      %18 = vector.load %arg7[%c0_15, %c0_16, %c0_17] : memref<1x1x64xf32, #tpu.memory_space<vmem>>, vector<1x1x64xf32>
      tpu.vector_store %arg7[%c0_15, %c0_16, %c0_17], %17 {strides = array<i32>} : memref<1x1x64xf32, #tpu.memory_space<vmem>>, vector<1x1x64xf32>,
      %19 = arith.mulf %15, %15 : vector<1024x64xf32>
      %cst_18 = arith.constant dense<0.000000e+00> : vector<64xf32>
      %20 = vector.multi_reduction <add>, %19, %cst_18 [0] : vector<1024x64xf32> to vector<64xf32>
      %21 = vector.shape_cast %20 : vector<64xf32> to vector<1x1x64xf32>
      %c0_19 = arith.constant 0 : index
      %c0_20 = arith.constant 0 : index
      %c0_21 = arith.constant 0 : index
      %22 = vector.load %arg8[%c0_19, %c0_20, %c0_21] : memref<1x1x64xf32, #tpu.memory_space<vmem>>, vector<1x1x64xf32>
      tpu.vector_store %arg8[%c0_19, %c0_20, %c0_21], %21 {strides = array<i32>} : memref<1x1x64xf32, #tpu.memory_space<vmem>>, vector<1x1x64xf32>,
      %23 = arith.truncf %15 : vector<1024x64xf32> to vector<1024x64xbf16>
      %c0_22 = arith.constant 0 : index
      %c0_23 = arith.constant 0 : index
      %24 = vector.load %arg6[%c0_22, %c0_23] : memref<1024x64xbf16, #tpu.memory_space<vmem>>, vector<1024x64xbf16>
      tpu.vector_store %arg6[%c0_22, %c0_23], %23 {strides = array<i32>} : memref<1024x64xbf16, #tpu.memory_space<vmem>>, vector<1024x64xbf16>,
    } else {
    }
    return
  }
  func.func @transform_0(%arg0: i32, %arg1: i32, %arg2: i32) -> (i32, i32) {
    %c0_i32 = arith.constant 0 : i32
    return %arg0, %arg2 : i32, i32
  }
  func.func @transform_1(%arg0: i32, %arg1: i32, %arg2: i32) -> (i32, i32) {
    %c0_i32 = arith.constant 0 : i32
    return %arg2, %arg1 : i32, i32
  }
  func.func @transform_2(%arg0: i32, %arg1: i32, %arg2: i32) -> (i32, i32) {
    %c0_i32 = arith.constant 0 : i32
    %c0_i32_0 = arith.constant 0 : i32
    return %c0_i32, %arg1 : i32, i32
  }
  func.func @transform_3(%arg0: i32, %arg1: i32, %arg2: i32) -> (i32, i32) {
    %c0_i32 = arith.constant 0 : i32
    return %arg0, %arg1 : i32, i32
  }
  func.func @transform_4(%arg0: i32, %arg1: i32, %arg2: i32) -> (i32, i32, i32) {
    %c0_i32 = arith.constant 0 : i32
    %c0_i32_0 = arith.constant 0 : i32
    return %arg0, %c0_i32, %arg1 : i32, i32, i32
  }
  func.func @transform_5(%arg0: i32, %arg1: i32, %arg2: i32) -> (i32, i32, i32) {
    %c0_i32 = arith.constant 0 : i32
    %c0_i32_0 = arith.constant 0 : i32
    return %arg0, %c0_i32, %arg1 : i32, i32, i32
  }
}

module attributes {stable_mosaic.version = 11 : i64} {
  func.func @_bn_relu_pool_kernel(%arg0: i32, %arg1: memref<64x2x32x128xbf16, #tpu.memory_space<vmem>>, %arg2: memref<1x128xf32, #tpu.memory_space<vmem>>, %arg3: memref<1x128xf32, #tpu.memory_space<vmem>>, %arg4: memref<64x32x64xbf16, #tpu.memory_space<vmem>>) attributes {dimension_semantics = [#tpu.dimension_semantics<parallel>], iteration_bounds = array<i64: 4>, scalar_prefetch = 0 : i64, scratch_operands = 0 : i64, tpu.core_type = #tpu.core_type<tc>, window_params = [{transform_indices = @transform_0, window_bounds = array<i64: 64, 2, 32, 128>}, {pipeline_mode = #tpu.pipeline_mode<synchronous>, transform_indices = @transform_1, window_bounds = array<i64: 1, 128>}, {pipeline_mode = #tpu.pipeline_mode<synchronous>, transform_indices = @transform_2, window_bounds = array<i64: 1, 128>}, {transform_indices = @transform_3, window_bounds = array<i64: 64, 32, 64>}]} {
    %c0 = arith.constant 0 : index
    %c0_0 = arith.constant 0 : index
    %c0_1 = arith.constant 0 : index
    %c0_2 = arith.constant 0 : index
    %0 = vector.load %arg1[%c0, %c0_0, %c0_1, %c0_2] : memref<64x2x32x128xbf16, #tpu.memory_space<vmem>>, vector<64x2x32x128xbf16>
    %1 = arith.extf %0 : vector<64x2x32x128xbf16> to vector<64x2x32x128xf32>
    %c0_3 = arith.constant 0 : index
    %c0_4 = arith.constant 0 : index
    %2 = vector.load %arg2[%c0_3, %c0_4] : memref<1x128xf32, #tpu.memory_space<vmem>>, vector<1x128xf32>
    %3 = vector.shape_cast %2 : vector<1x128xf32> to vector<1x1x1x128xf32>
    %4 = vector.broadcast %3 : vector<1x1x1x128xf32> to vector<64x2x32x128xf32>
    %5 = arith.mulf %1, %4 : vector<64x2x32x128xf32>
    %c0_5 = arith.constant 0 : index
    %c0_6 = arith.constant 0 : index
    %6 = vector.load %arg3[%c0_5, %c0_6] : memref<1x128xf32, #tpu.memory_space<vmem>>, vector<1x128xf32>
    %7 = vector.shape_cast %6 : vector<1x128xf32> to vector<1x1x1x128xf32>
    %8 = vector.broadcast %7 : vector<1x1x1x128xf32> to vector<64x2x32x128xf32>
    %9 = arith.addf %5, %8 : vector<64x2x32x128xf32>
    %cst = arith.constant 0.000000e+00 : f32
    %10 = vector.broadcast %cst : f32 to vector<64x2x32x128xf32>
    %11 = arith.maximumf %9, %10 : vector<64x2x32x128xf32>
    %12 = vector.extract_strided_slice %11 {offsets = [0, 0, 0, 0], sizes = [64, 1, 32, 128], strides = [1, 1, 1, 1]} : vector<64x2x32x128xf32> to vector<64x1x32x128xf32>
    %13 = vector.shape_cast %12 : vector<64x1x32x128xf32> to vector<64x32x128xf32>
    %14 = vector.extract_strided_slice %11 {offsets = [0, 1, 0, 0], sizes = [64, 1, 32, 128], strides = [1, 1, 1, 1]} : vector<64x2x32x128xf32> to vector<64x1x32x128xf32>
    %15 = vector.shape_cast %14 : vector<64x1x32x128xf32> to vector<64x32x128xf32>
    %16 = arith.maximumf %13, %15 : vector<64x32x128xf32>
    %17 = vector.extract_strided_slice %16 {offsets = [0, 0, 0], sizes = [64, 32, 64], strides = [1, 1, 1]} : vector<64x32x128xf32> to vector<64x32x64xf32>
    %18 = vector.extract_strided_slice %16 {offsets = [0, 0, 64], sizes = [64, 32, 64], strides = [1, 1, 1]} : vector<64x32x128xf32> to vector<64x32x64xf32>
    %19 = arith.maximumf %17, %18 : vector<64x32x64xf32>
    %20 = arith.truncf %19 : vector<64x32x64xf32> to vector<64x32x64xbf16>
    %c0_7 = arith.constant 0 : index
    %c0_8 = arith.constant 0 : index
    %c0_9 = arith.constant 0 : index
    %21 = vector.load %arg4[%c0_7, %c0_8, %c0_9] : memref<64x32x64xbf16, #tpu.memory_space<vmem>>, vector<64x32x64xbf16>
    tpu.vector_store %arg4[%c0_7, %c0_8, %c0_9], %20 {strides = array<i32>} : memref<64x32x64xbf16, #tpu.memory_space<vmem>>, vector<64x32x64xbf16>,
    return
  }
  func.func @transform_0(%arg0: i32) -> (i32, i32, i32, i32) {
    %c0_i32 = arith.constant 0 : i32
    %c0_i32_0 = arith.constant 0 : i32
    %c0_i32_1 = arith.constant 0 : i32
    %c0_i32_2 = arith.constant 0 : i32
    return %arg0, %c0_i32, %c0_i32_0, %c0_i32_1 : i32, i32, i32, i32
  }
  func.func @transform_1(%arg0: i32) -> (i32, i32) {
    %c0_i32 = arith.constant 0 : i32
    %c0_i32_0 = arith.constant 0 : i32
    %c0_i32_1 = arith.constant 0 : i32
    return %c0_i32, %c0_i32_0 : i32, i32
  }
  func.func @transform_2(%arg0: i32) -> (i32, i32) {
    %c0_i32 = arith.constant 0 : i32
    %c0_i32_0 = arith.constant 0 : i32
    %c0_i32_1 = arith.constant 0 : i32
    return %c0_i32, %c0_i32_0 : i32, i32
  }
  func.func @transform_3(%arg0: i32) -> (i32, i32, i32) {
    %c0_i32 = arith.constant 0 : i32
    %c0_i32_0 = arith.constant 0 : i32
    %c0_i32_1 = arith.constant 0 : i32
    return %arg0, %c0_i32, %c0_i32_0 : i32, i32, i32
  }
}

module attributes {stable_mosaic.version = 11 : i64} {
  func.func @_matmul_kernel(%arg0: i32, %arg1: i32, %arg2: i32, %arg3: memref<1024x640xbf16, #tpu.memory_space<vmem>>, %arg4: memref<640x128xbf16, #tpu.memory_space<vmem>>, %arg5: memref<1x128xf32, #tpu.memory_space<vmem>>, %arg6: memref<1024x128xbf16, #tpu.memory_space<vmem>>, %arg7: memref<1x1x128xf32, #tpu.memory_space<vmem>>, %arg8: memref<1x1x128xf32, #tpu.memory_space<vmem>>, %arg9: memref<1024x128xf32, #tpu.memory_space<vmem>>) attributes {dimension_semantics = [#tpu.dimension_semantics<parallel>, #tpu.dimension_semantics<parallel>, #tpu.dimension_semantics<arbitrary>], iteration_bounds = array<i64: 12, 1, 1>, scalar_prefetch = 0 : i64, scratch_operands = 1 : i64, tpu.core_type = #tpu.core_type<tc>, window_params = [{transform_indices = @transform_0, window_bounds = array<i64: 1024, 640>}, {transform_indices = @transform_1, window_bounds = array<i64: 640, 128>}, {transform_indices = @transform_2, window_bounds = array<i64: 1, 128>}, {transform_indices = @transform_3, window_bounds = array<i64: 1024, 128>}, {transform_indices = @transform_4, window_bounds = array<i64: 1, 1, 128>}, {transform_indices = @transform_5, window_bounds = array<i64: 1, 1, 128>}]} {
    %c0_i32 = arith.constant 0 : i32
    %0 = arith.cmpi eq, %arg2, %c0_i32 : i32
    %1 = arith.extui %0 : i1 to i32
    %c0_i32_0 = arith.constant 0 : i32
    %2 = arith.cmpi ne, %1, %c0_i32_0 : i32
    scf.if %2 {
      %cst_10 = arith.constant 0.000000e+00 : f32
      %12 = vector.broadcast %cst_10 : f32 to vector<1024x128xf32>
      %c0_11 = arith.constant 0 : index
      %c0_12 = arith.constant 0 : index
      %13 = vector.load %arg9[%c0_11, %c0_12] : memref<1024x128xf32, #tpu.memory_space<vmem>>, vector<1024x128xf32>
      tpu.vector_store %arg9[%c0_11, %c0_12], %12 {strides = array<i32>} : memref<1024x128xf32, #tpu.memory_space<vmem>>, vector<1024x128xf32>,
    } else {
    }
    %c0 = arith.constant 0 : index
    %c0_1 = arith.constant 0 : index
    %3 = vector.load %arg9[%c0, %c0_1] : memref<1024x128xf32, #tpu.memory_space<vmem>>, vector<1024x128xf32>
    %c0_2 = arith.constant 0 : index
    %c0_3 = arith.constant 0 : index
    %4 = vector.load %arg3[%c0_2, %c0_3] : memref<1024x640xbf16, #tpu.memory_space<vmem>>, vector<1024x640xbf16>
    %c0_4 = arith.constant 0 : index
    %c0_5 = arith.constant 0 : index
    %5 = vector.load %arg4[%c0_4, %c0_5] : memref<640x128xbf16, #tpu.memory_space<vmem>>, vector<640x128xbf16>
    %cst = arith.constant dense<0.000000e+00> : vector<1024x128xf32>
    %6 = tpu.matmul %4, %5, %cst {dimension_numbers = #tpu.dot_dimension_numbers<[1], [0], [0], [1], [0, 0, 1, 1], [], []>} : vector<1024x640xbf16>, vector<640x128xbf16>, vector<1024x128xf32> -> vector<1024x128xf32>
    %7 = arith.addf %3, %6 : vector<1024x128xf32>
    %c0_6 = arith.constant 0 : index
    %c0_7 = arith.constant 0 : index
    %8 = vector.load %arg9[%c0_6, %c0_7] : memref<1024x128xf32, #tpu.memory_space<vmem>>, vector<1024x128xf32>
    tpu.vector_store %arg9[%c0_6, %c0_7], %7 {strides = array<i32>} : memref<1024x128xf32, #tpu.memory_space<vmem>>, vector<1024x128xf32>,
    %c0_i32_8 = arith.constant 0 : i32
    %9 = arith.cmpi eq, %arg2, %c0_i32_8 : i32
    %10 = arith.extui %9 : i1 to i32
    %c0_i32_9 = arith.constant 0 : i32
    %11 = arith.cmpi ne, %10, %c0_i32_9 : i32
    scf.if %11 {
      %c0_10 = arith.constant 0 : index
      %c0_11 = arith.constant 0 : index
      %12 = vector.load %arg9[%c0_10, %c0_11] : memref<1024x128xf32, #tpu.memory_space<vmem>>, vector<1024x128xf32>
      %c0_12 = arith.constant 0 : index
      %c0_13 = arith.constant 0 : index
      %13 = vector.load %arg5[%c0_12, %c0_13] : memref<1x128xf32, #tpu.memory_space<vmem>>, vector<1x128xf32>
      %14 = vector.broadcast %13 : vector<1x128xf32> to vector<1024x128xf32>
      %15 = arith.addf %12, %14 : vector<1024x128xf32>
      %cst_14 = arith.constant dense<0.000000e+00> : vector<128xf32>
      %16 = vector.multi_reduction <add>, %15, %cst_14 [0] : vector<1024x128xf32> to vector<128xf32>
      %17 = vector.shape_cast %16 : vector<128xf32> to vector<1x1x128xf32>
      %c0_15 = arith.constant 0 : index
      %c0_16 = arith.constant 0 : index
      %c0_17 = arith.constant 0 : index
      %18 = vector.load %arg7[%c0_15, %c0_16, %c0_17] : memref<1x1x128xf32, #tpu.memory_space<vmem>>, vector<1x1x128xf32>
      tpu.vector_store %arg7[%c0_15, %c0_16, %c0_17], %17 {strides = array<i32>} : memref<1x1x128xf32, #tpu.memory_space<vmem>>, vector<1x1x128xf32>,
      %19 = arith.mulf %15, %15 : vector<1024x128xf32>
      %cst_18 = arith.constant dense<0.000000e+00> : vector<128xf32>
      %20 = vector.multi_reduction <add>, %19, %cst_18 [0] : vector<1024x128xf32> to vector<128xf32>
      %21 = vector.shape_cast %20 : vector<128xf32> to vector<1x1x128xf32>
      %c0_19 = arith.constant 0 : index
      %c0_20 = arith.constant 0 : index
      %c0_21 = arith.constant 0 : index
      %22 = vector.load %arg8[%c0_19, %c0_20, %c0_21] : memref<1x1x128xf32, #tpu.memory_space<vmem>>, vector<1x1x128xf32>
      tpu.vector_store %arg8[%c0_19, %c0_20, %c0_21], %21 {strides = array<i32>} : memref<1x1x128xf32, #tpu.memory_space<vmem>>, vector<1x1x128xf32>,
      %23 = arith.truncf %15 : vector<1024x128xf32> to vector<1024x128xbf16>
      %c0_22 = arith.constant 0 : index
      %c0_23 = arith.constant 0 : index
      %24 = vector.load %arg6[%c0_22, %c0_23] : memref<1024x128xbf16, #tpu.memory_space<vmem>>, vector<1024x128xbf16>
      tpu.vector_store %arg6[%c0_22, %c0_23], %23 {strides = array<i32>} : memref<1024x128xbf16, #tpu.memory_space<vmem>>, vector<1024x128xbf16>,
    } else {
    }
    return
  }
  func.func @transform_0(%arg0: i32, %arg1: i32, %arg2: i32) -> (i32, i32) {
    %c0_i32 = arith.constant 0 : i32
    return %arg0, %arg2 : i32, i32
  }
  func.func @transform_1(%arg0: i32, %arg1: i32, %arg2: i32) -> (i32, i32) {
    %c0_i32 = arith.constant 0 : i32
    return %arg2, %arg1 : i32, i32
  }
  func.func @transform_2(%arg0: i32, %arg1: i32, %arg2: i32) -> (i32, i32) {
    %c0_i32 = arith.constant 0 : i32
    %c0_i32_0 = arith.constant 0 : i32
    return %c0_i32, %arg1 : i32, i32
  }
  func.func @transform_3(%arg0: i32, %arg1: i32, %arg2: i32) -> (i32, i32) {
    %c0_i32 = arith.constant 0 : i32
    return %arg0, %arg1 : i32, i32
  }
  func.func @transform_4(%arg0: i32, %arg1: i32, %arg2: i32) -> (i32, i32, i32) {
    %c0_i32 = arith.constant 0 : i32
    %c0_i32_0 = arith.constant 0 : i32
    return %arg0, %c0_i32, %arg1 : i32, i32, i32
  }
  func.func @transform_5(%arg0: i32, %arg1: i32, %arg2: i32) -> (i32, i32, i32) {
    %c0_i32 = arith.constant 0 : i32
    %c0_i32_0 = arith.constant 0 : i32
    return %arg0, %c0_i32, %arg1 : i32, i32, i32
  }
}

module attributes {stable_mosaic.version = 11 : i64} {
  func.func @_bn_relu_pool_kernel(%arg0: i32, %arg1: memref<64x2x16x256xbf16, #tpu.memory_space<vmem>>, %arg2: memref<1x256xf32, #tpu.memory_space<vmem>>, %arg3: memref<1x256xf32, #tpu.memory_space<vmem>>, %arg4: memref<64x16x128xbf16, #tpu.memory_space<vmem>>) attributes {dimension_semantics = [#tpu.dimension_semantics<parallel>], iteration_bounds = array<i64: 3>, scalar_prefetch = 0 : i64, scratch_operands = 0 : i64, tpu.core_type = #tpu.core_type<tc>, window_params = [{transform_indices = @transform_0, window_bounds = array<i64: 64, 2, 16, 256>}, {pipeline_mode = #tpu.pipeline_mode<synchronous>, transform_indices = @transform_1, window_bounds = array<i64: 1, 256>}, {pipeline_mode = #tpu.pipeline_mode<synchronous>, transform_indices = @transform_2, window_bounds = array<i64: 1, 256>}, {transform_indices = @transform_3, window_bounds = array<i64: 64, 16, 128>}]} {
    %c0 = arith.constant 0 : index
    %c0_0 = arith.constant 0 : index
    %c0_1 = arith.constant 0 : index
    %c0_2 = arith.constant 0 : index
    %0 = vector.load %arg1[%c0, %c0_0, %c0_1, %c0_2] : memref<64x2x16x256xbf16, #tpu.memory_space<vmem>>, vector<64x2x16x256xbf16>
    %1 = arith.extf %0 : vector<64x2x16x256xbf16> to vector<64x2x16x256xf32>
    %c0_3 = arith.constant 0 : index
    %c0_4 = arith.constant 0 : index
    %2 = vector.load %arg2[%c0_3, %c0_4] : memref<1x256xf32, #tpu.memory_space<vmem>>, vector<1x256xf32>
    %3 = vector.shape_cast %2 : vector<1x256xf32> to vector<1x1x1x256xf32>
    %4 = vector.broadcast %3 : vector<1x1x1x256xf32> to vector<64x2x16x256xf32>
    %5 = arith.mulf %1, %4 : vector<64x2x16x256xf32>
    %c0_5 = arith.constant 0 : index
    %c0_6 = arith.constant 0 : index
    %6 = vector.load %arg3[%c0_5, %c0_6] : memref<1x256xf32, #tpu.memory_space<vmem>>, vector<1x256xf32>
    %7 = vector.shape_cast %6 : vector<1x256xf32> to vector<1x1x1x256xf32>
    %8 = vector.broadcast %7 : vector<1x1x1x256xf32> to vector<64x2x16x256xf32>
    %9 = arith.addf %5, %8 : vector<64x2x16x256xf32>
    %cst = arith.constant 0.000000e+00 : f32
    %10 = vector.broadcast %cst : f32 to vector<64x2x16x256xf32>
    %11 = arith.maximumf %9, %10 : vector<64x2x16x256xf32>
    %12 = vector.extract_strided_slice %11 {offsets = [0, 0, 0, 0], sizes = [64, 1, 16, 256], strides = [1, 1, 1, 1]} : vector<64x2x16x256xf32> to vector<64x1x16x256xf32>
    %13 = vector.shape_cast %12 : vector<64x1x16x256xf32> to vector<64x16x256xf32>
    %14 = vector.extract_strided_slice %11 {offsets = [0, 1, 0, 0], sizes = [64, 1, 16, 256], strides = [1, 1, 1, 1]} : vector<64x2x16x256xf32> to vector<64x1x16x256xf32>
    %15 = vector.shape_cast %14 : vector<64x1x16x256xf32> to vector<64x16x256xf32>
    %16 = arith.maximumf %13, %15 : vector<64x16x256xf32>
    %17 = vector.extract_strided_slice %16 {offsets = [0, 0, 0], sizes = [64, 16, 128], strides = [1, 1, 1]} : vector<64x16x256xf32> to vector<64x16x128xf32>
    %18 = vector.extract_strided_slice %16 {offsets = [0, 0, 128], sizes = [64, 16, 128], strides = [1, 1, 1]} : vector<64x16x256xf32> to vector<64x16x128xf32>
    %19 = arith.maximumf %17, %18 : vector<64x16x128xf32>
    %20 = arith.truncf %19 : vector<64x16x128xf32> to vector<64x16x128xbf16>
    %c0_7 = arith.constant 0 : index
    %c0_8 = arith.constant 0 : index
    %c0_9 = arith.constant 0 : index
    %21 = vector.load %arg4[%c0_7, %c0_8, %c0_9] : memref<64x16x128xbf16, #tpu.memory_space<vmem>>, vector<64x16x128xbf16>
    tpu.vector_store %arg4[%c0_7, %c0_8, %c0_9], %20 {strides = array<i32>} : memref<64x16x128xbf16, #tpu.memory_space<vmem>>, vector<64x16x128xbf16>,
    return
  }
  func.func @transform_0(%arg0: i32) -> (i32, i32, i32, i32) {
    %c0_i32 = arith.constant 0 : i32
    %c0_i32_0 = arith.constant 0 : i32
    %c0_i32_1 = arith.constant 0 : i32
    %c0_i32_2 = arith.constant 0 : i32
    return %arg0, %c0_i32, %c0_i32_0, %c0_i32_1 : i32, i32, i32, i32
  }
  func.func @transform_1(%arg0: i32) -> (i32, i32) {
    %c0_i32 = arith.constant 0 : i32
    %c0_i32_0 = arith.constant 0 : i32
    %c0_i32_1 = arith.constant 0 : i32
    return %c0_i32, %c0_i32_0 : i32, i32
  }
  func.func @transform_2(%arg0: i32) -> (i32, i32) {
    %c0_i32 = arith.constant 0 : i32
    %c0_i32_0 = arith.constant 0 : i32
    %c0_i32_1 = arith.constant 0 : i32
    return %c0_i32, %c0_i32_0 : i32, i32
  }
  func.func @transform_3(%arg0: i32) -> (i32, i32, i32) {
    %c0_i32 = arith.constant 0 : i32
    %c0_i32_0 = arith.constant 0 : i32
    %c0_i32_1 = arith.constant 0 : i32
    return %arg0, %c0_i32, %c0_i32_0 : i32, i32, i32
  }
}

module attributes {stable_mosaic.version = 11 : i64} {
  func.func @_matmul_kernel(%arg0: i32, %arg1: i32, %arg2: i32, %arg3: memref<384x1152xbf16, #tpu.memory_space<vmem>>, %arg4: memref<1152x256xbf16, #tpu.memory_space<vmem>>, %arg5: memref<1x256xf32, #tpu.memory_space<vmem>>, %arg6: memref<384x256xbf16, #tpu.memory_space<vmem>>, %arg7: memref<384x256xf32, #tpu.memory_space<vmem>>) attributes {dimension_semantics = [#tpu.dimension_semantics<parallel>, #tpu.dimension_semantics<parallel>, #tpu.dimension_semantics<arbitrary>], iteration_bounds = array<i64: 2, 1, 1>, scalar_prefetch = 0 : i64, scratch_operands = 1 : i64, tpu.core_type = #tpu.core_type<tc>, window_params = [{transform_indices = @transform_0, window_bounds = array<i64: 384, 1152>}, {transform_indices = @transform_1, window_bounds = array<i64: 1152, 256>}, {transform_indices = @transform_2, window_bounds = array<i64: 1, 256>}, {transform_indices = @transform_3, window_bounds = array<i64: 384, 256>}]} {
    %c0_i32 = arith.constant 0 : i32
    %0 = arith.cmpi eq, %arg2, %c0_i32 : i32
    %1 = arith.extui %0 : i1 to i32
    %c0_i32_0 = arith.constant 0 : i32
    %2 = arith.cmpi ne, %1, %c0_i32_0 : i32
    scf.if %2 {
      %cst_10 = arith.constant 0.000000e+00 : f32
      %12 = vector.broadcast %cst_10 : f32 to vector<384x256xf32>
      %c0_11 = arith.constant 0 : index
      %c0_12 = arith.constant 0 : index
      %13 = vector.load %arg7[%c0_11, %c0_12] : memref<384x256xf32, #tpu.memory_space<vmem>>, vector<384x256xf32>
      tpu.vector_store %arg7[%c0_11, %c0_12], %12 {strides = array<i32>} : memref<384x256xf32, #tpu.memory_space<vmem>>, vector<384x256xf32>,
    } else {
    }
    %c0 = arith.constant 0 : index
    %c0_1 = arith.constant 0 : index
    %3 = vector.load %arg7[%c0, %c0_1] : memref<384x256xf32, #tpu.memory_space<vmem>>, vector<384x256xf32>
    %c0_2 = arith.constant 0 : index
    %c0_3 = arith.constant 0 : index
    %4 = vector.load %arg3[%c0_2, %c0_3] : memref<384x1152xbf16, #tpu.memory_space<vmem>>, vector<384x1152xbf16>
    %c0_4 = arith.constant 0 : index
    %c0_5 = arith.constant 0 : index
    %5 = vector.load %arg4[%c0_4, %c0_5] : memref<1152x256xbf16, #tpu.memory_space<vmem>>, vector<1152x256xbf16>
    %cst = arith.constant dense<0.000000e+00> : vector<384x256xf32>
    %6 = tpu.matmul %4, %5, %cst {dimension_numbers = #tpu.dot_dimension_numbers<[1], [0], [0], [1], [0, 0, 1, 1], [], []>} : vector<384x1152xbf16>, vector<1152x256xbf16>, vector<384x256xf32> -> vector<384x256xf32>
    %7 = arith.addf %3, %6 : vector<384x256xf32>
    %c0_6 = arith.constant 0 : index
    %c0_7 = arith.constant 0 : index
    %8 = vector.load %arg7[%c0_6, %c0_7] : memref<384x256xf32, #tpu.memory_space<vmem>>, vector<384x256xf32>
    tpu.vector_store %arg7[%c0_6, %c0_7], %7 {strides = array<i32>} : memref<384x256xf32, #tpu.memory_space<vmem>>, vector<384x256xf32>,
    %c0_i32_8 = arith.constant 0 : i32
    %9 = arith.cmpi eq, %arg2, %c0_i32_8 : i32
    %10 = arith.extui %9 : i1 to i32
    %c0_i32_9 = arith.constant 0 : i32
    %11 = arith.cmpi ne, %10, %c0_i32_9 : i32
    scf.if %11 {
      %c0_10 = arith.constant 0 : index
      %c0_11 = arith.constant 0 : index
      %12 = vector.load %arg7[%c0_10, %c0_11] : memref<384x256xf32, #tpu.memory_space<vmem>>, vector<384x256xf32>
      %c0_12 = arith.constant 0 : index
      %c0_13 = arith.constant 0 : index
      %13 = vector.load %arg5[%c0_12, %c0_13] : memref<1x256xf32, #tpu.memory_space<vmem>>, vector<1x256xf32>
      %14 = vector.broadcast %13 : vector<1x256xf32> to vector<384x256xf32>
      %15 = arith.addf %12, %14 : vector<384x256xf32>
      %cst_14 = arith.constant 0.000000e+00 : f32
      %16 = vector.broadcast %cst_14 : f32 to vector<384x256xf32>
      %17 = arith.maximumf %15, %16 : vector<384x256xf32>
      %18 = arith.truncf %17 : vector<384x256xf32> to vector<384x256xbf16>
      %c0_15 = arith.constant 0 : index
      %c0_16 = arith.constant 0 : index
      %19 = vector.load %arg6[%c0_15, %c0_16] : memref<384x256xbf16, #tpu.memory_space<vmem>>, vector<384x256xbf16>
      tpu.vector_store %arg6[%c0_15, %c0_16], %18 {strides = array<i32>} : memref<384x256xbf16, #tpu.memory_space<vmem>>, vector<384x256xbf16>,
    } else {
    }
    return
  }
  func.func @transform_0(%arg0: i32, %arg1: i32, %arg2: i32) -> (i32, i32) {
    %c0_i32 = arith.constant 0 : i32
    return %arg0, %arg2 : i32, i32
  }
  func.func @transform_1(%arg0: i32, %arg1: i32, %arg2: i32) -> (i32, i32) {
    %c0_i32 = arith.constant 0 : i32
    return %arg2, %arg1 : i32, i32
  }
  func.func @transform_2(%arg0: i32, %arg1: i32, %arg2: i32) -> (i32, i32) {
    %c0_i32 = arith.constant 0 : i32
    %c0_i32_0 = arith.constant 0 : i32
    return %c0_i32, %arg1 : i32, i32
  }
  func.func @transform_3(%arg0: i32, %arg1: i32, %arg2: i32) -> (i32, i32) {
    %c0_i32 = arith.constant 0 : i32
    return %arg0, %arg1 : i32, i32
  }
}

module attributes {stable_mosaic.version = 11 : i64} {
  func.func @_matmul_kernel(%arg0: i32, %arg1: i32, %arg2: i32, %arg3: memref<432x2304xbf16, #tpu.memory_space<vmem>>, %arg4: memref<2304x256xbf16, #tpu.memory_space<vmem>>, %arg5: memref<1x256xf32, #tpu.memory_space<vmem>>, %arg6: memref<432x256xbf16, #tpu.memory_space<vmem>>, %arg7: memref<432x256xf32, #tpu.memory_space<vmem>>) attributes {dimension_semantics = [#tpu.dimension_semantics<parallel>, #tpu.dimension_semantics<parallel>, #tpu.dimension_semantics<arbitrary>], iteration_bounds = array<i64: 1, 1, 1>, scalar_prefetch = 0 : i64, scratch_operands = 1 : i64, tpu.core_type = #tpu.core_type<tc>, window_params = [{transform_indices = @transform_0, window_bounds = array<i64: 432, 2304>}, {transform_indices = @transform_1, window_bounds = array<i64: 2304, 256>}, {transform_indices = @transform_2, window_bounds = array<i64: 1, 256>}, {transform_indices = @transform_3, window_bounds = array<i64: 432, 256>}]} {
    %c0_i32 = arith.constant 0 : i32
    %0 = arith.cmpi eq, %arg2, %c0_i32 : i32
    %1 = arith.extui %0 : i1 to i32
    %c0_i32_0 = arith.constant 0 : i32
    %2 = arith.cmpi ne, %1, %c0_i32_0 : i32
    scf.if %2 {
      %cst_10 = arith.constant 0.000000e+00 : f32
      %12 = vector.broadcast %cst_10 : f32 to vector<432x256xf32>
      %c0_11 = arith.constant 0 : index
      %c0_12 = arith.constant 0 : index
      %13 = vector.load %arg7[%c0_11, %c0_12] : memref<432x256xf32, #tpu.memory_space<vmem>>, vector<432x256xf32>
      tpu.vector_store %arg7[%c0_11, %c0_12], %12 {strides = array<i32>} : memref<432x256xf32, #tpu.memory_space<vmem>>, vector<432x256xf32>,
    } else {
    }
    %c0 = arith.constant 0 : index
    %c0_1 = arith.constant 0 : index
    %3 = vector.load %arg7[%c0, %c0_1] : memref<432x256xf32, #tpu.memory_space<vmem>>, vector<432x256xf32>
    %c0_2 = arith.constant 0 : index
    %c0_3 = arith.constant 0 : index
    %4 = vector.load %arg3[%c0_2, %c0_3] : memref<432x2304xbf16, #tpu.memory_space<vmem>>, vector<432x2304xbf16>
    %c0_4 = arith.constant 0 : index
    %c0_5 = arith.constant 0 : index
    %5 = vector.load %arg4[%c0_4, %c0_5] : memref<2304x256xbf16, #tpu.memory_space<vmem>>, vector<2304x256xbf16>
    %cst = arith.constant dense<0.000000e+00> : vector<432x256xf32>
    %6 = tpu.matmul %4, %5, %cst {dimension_numbers = #tpu.dot_dimension_numbers<[1], [0], [0], [1], [0, 0, 1, 1], [], []>} : vector<432x2304xbf16>, vector<2304x256xbf16>, vector<432x256xf32> -> vector<432x256xf32>
    %7 = arith.addf %3, %6 : vector<432x256xf32>
    %c0_6 = arith.constant 0 : index
    %c0_7 = arith.constant 0 : index
    %8 = vector.load %arg7[%c0_6, %c0_7] : memref<432x256xf32, #tpu.memory_space<vmem>>, vector<432x256xf32>
    tpu.vector_store %arg7[%c0_6, %c0_7], %7 {strides = array<i32>} : memref<432x256xf32, #tpu.memory_space<vmem>>, vector<432x256xf32>,
    %c0_i32_8 = arith.constant 0 : i32
    %9 = arith.cmpi eq, %arg2, %c0_i32_8 : i32
    %10 = arith.extui %9 : i1 to i32
    %c0_i32_9 = arith.constant 0 : i32
    %11 = arith.cmpi ne, %10, %c0_i32_9 : i32
    scf.if %11 {
      %c0_10 = arith.constant 0 : index
      %c0_11 = arith.constant 0 : index
      %12 = vector.load %arg7[%c0_10, %c0_11] : memref<432x256xf32, #tpu.memory_space<vmem>>, vector<432x256xf32>
      %c0_12 = arith.constant 0 : index
      %c0_13 = arith.constant 0 : index
      %13 = vector.load %arg5[%c0_12, %c0_13] : memref<1x256xf32, #tpu.memory_space<vmem>>, vector<1x256xf32>
      %14 = vector.broadcast %13 : vector<1x256xf32> to vector<432x256xf32>
      %15 = arith.addf %12, %14 : vector<432x256xf32>
      %cst_14 = arith.constant 0.000000e+00 : f32
      %16 = vector.broadcast %cst_14 : f32 to vector<432x256xf32>
      %17 = arith.maximumf %15, %16 : vector<432x256xf32>
      %18 = arith.truncf %17 : vector<432x256xf32> to vector<432x256xbf16>
      %c0_15 = arith.constant 0 : index
      %c0_16 = arith.constant 0 : index
      %19 = vector.load %arg6[%c0_15, %c0_16] : memref<432x256xbf16, #tpu.memory_space<vmem>>, vector<432x256xbf16>
      tpu.vector_store %arg6[%c0_15, %c0_16], %18 {strides = array<i32>} : memref<432x256xbf16, #tpu.memory_space<vmem>>, vector<432x256xbf16>,
    } else {
    }
    return
  }
  func.func @transform_0(%arg0: i32, %arg1: i32, %arg2: i32) -> (i32, i32) {
    %c0_i32 = arith.constant 0 : i32
    return %arg0, %arg2 : i32, i32
  }
  func.func @transform_1(%arg0: i32, %arg1: i32, %arg2: i32) -> (i32, i32) {
    %c0_i32 = arith.constant 0 : i32
    return %arg2, %arg1 : i32, i32
  }
  func.func @transform_2(%arg0: i32, %arg1: i32, %arg2: i32) -> (i32, i32) {
    %c0_i32 = arith.constant 0 : i32
    %c0_i32_0 = arith.constant 0 : i32
    return %c0_i32, %arg1 : i32, i32
  }
  func.func @transform_3(%arg0: i32, %arg1: i32, %arg2: i32) -> (i32, i32) {
    %c0_i32 = arith.constant 0 : i32
    return %arg0, %arg1 : i32, i32
  }
}

module attributes {stable_mosaic.version = 11 : i64} {
  func.func @_matmul_kernel(%arg0: i32, %arg1: i32, %arg2: i32, %arg3: memref<192x2304xbf16, #tpu.memory_space<vmem>>, %arg4: memref<2304x256xbf16, #tpu.memory_space<vmem>>, %arg5: memref<1x256xf32, #tpu.memory_space<vmem>>, %arg6: memref<192x256xbf16, #tpu.memory_space<vmem>>, %arg7: memref<192x256xf32, #tpu.memory_space<vmem>>) attributes {dimension_semantics = [#tpu.dimension_semantics<parallel>, #tpu.dimension_semantics<parallel>, #tpu.dimension_semantics<arbitrary>], iteration_bounds = array<i64: 1, 1, 1>, scalar_prefetch = 0 : i64, scratch_operands = 1 : i64, tpu.core_type = #tpu.core_type<tc>, window_params = [{transform_indices = @transform_0, window_bounds = array<i64: 192, 2304>}, {transform_indices = @transform_1, window_bounds = array<i64: 2304, 256>}, {transform_indices = @transform_2, window_bounds = array<i64: 1, 256>}, {transform_indices = @transform_3, window_bounds = array<i64: 192, 256>}]} {
    %c0_i32 = arith.constant 0 : i32
    %0 = arith.cmpi eq, %arg2, %c0_i32 : i32
    %1 = arith.extui %0 : i1 to i32
    %c0_i32_0 = arith.constant 0 : i32
    %2 = arith.cmpi ne, %1, %c0_i32_0 : i32
    scf.if %2 {
      %cst_10 = arith.constant 0.000000e+00 : f32
      %12 = vector.broadcast %cst_10 : f32 to vector<192x256xf32>
      %c0_11 = arith.constant 0 : index
      %c0_12 = arith.constant 0 : index
      %13 = vector.load %arg7[%c0_11, %c0_12] : memref<192x256xf32, #tpu.memory_space<vmem>>, vector<192x256xf32>
      tpu.vector_store %arg7[%c0_11, %c0_12], %12 {strides = array<i32>} : memref<192x256xf32, #tpu.memory_space<vmem>>, vector<192x256xf32>,
    } else {
    }
    %c0 = arith.constant 0 : index
    %c0_1 = arith.constant 0 : index
    %3 = vector.load %arg7[%c0, %c0_1] : memref<192x256xf32, #tpu.memory_space<vmem>>, vector<192x256xf32>
    %c0_2 = arith.constant 0 : index
    %c0_3 = arith.constant 0 : index
    %4 = vector.load %arg3[%c0_2, %c0_3] : memref<192x2304xbf16, #tpu.memory_space<vmem>>, vector<192x2304xbf16>
    %c0_4 = arith.constant 0 : index
    %c0_5 = arith.constant 0 : index
    %5 = vector.load %arg4[%c0_4, %c0_5] : memref<2304x256xbf16, #tpu.memory_space<vmem>>, vector<2304x256xbf16>
    %cst = arith.constant dense<0.000000e+00> : vector<192x256xf32>
    %6 = tpu.matmul %4, %5, %cst {dimension_numbers = #tpu.dot_dimension_numbers<[1], [0], [0], [1], [0, 0, 1, 1], [], []>} : vector<192x2304xbf16>, vector<2304x256xbf16>, vector<192x256xf32> -> vector<192x256xf32>
    %7 = arith.addf %3, %6 : vector<192x256xf32>
    %c0_6 = arith.constant 0 : index
    %c0_7 = arith.constant 0 : index
    %8 = vector.load %arg7[%c0_6, %c0_7] : memref<192x256xf32, #tpu.memory_space<vmem>>, vector<192x256xf32>
    tpu.vector_store %arg7[%c0_6, %c0_7], %7 {strides = array<i32>} : memref<192x256xf32, #tpu.memory_space<vmem>>, vector<192x256xf32>,
    %c0_i32_8 = arith.constant 0 : i32
    %9 = arith.cmpi eq, %arg2, %c0_i32_8 : i32
    %10 = arith.extui %9 : i1 to i32
    %c0_i32_9 = arith.constant 0 : i32
    %11 = arith.cmpi ne, %10, %c0_i32_9 : i32
    scf.if %11 {
      %c0_10 = arith.constant 0 : index
      %c0_11 = arith.constant 0 : index
      %12 = vector.load %arg7[%c0_10, %c0_11] : memref<192x256xf32, #tpu.memory_space<vmem>>, vector<192x256xf32>
      %c0_12 = arith.constant 0 : index
      %c0_13 = arith.constant 0 : index
      %13 = vector.load %arg5[%c0_12, %c0_13] : memref<1x256xf32, #tpu.memory_space<vmem>>, vector<1x256xf32>
      %14 = vector.broadcast %13 : vector<1x256xf32> to vector<192x256xf32>
      %15 = arith.addf %12, %14 : vector<192x256xf32>
      %cst_14 = arith.constant 0.000000e+00 : f32
      %16 = vector.broadcast %cst_14 : f32 to vector<192x256xf32>
      %17 = arith.maximumf %15, %16 : vector<192x256xf32>
      %18 = arith.truncf %17 : vector<192x256xf32> to vector<192x256xbf16>
      %c0_15 = arith.constant 0 : index
      %c0_16 = arith.constant 0 : index
      %19 = vector.load %arg6[%c0_15, %c0_16] : memref<192x256xbf16, #tpu.memory_space<vmem>>, vector<192x256xbf16>
      tpu.vector_store %arg6[%c0_15, %c0_16], %18 {strides = array<i32>} : memref<192x256xbf16, #tpu.memory_space<vmem>>, vector<192x256xbf16>,
    } else {
    }
    return
  }
  func.func @transform_0(%arg0: i32, %arg1: i32, %arg2: i32) -> (i32, i32) {
    %c0_i32 = arith.constant 0 : i32
    return %arg0, %arg2 : i32, i32
  }
  func.func @transform_1(%arg0: i32, %arg1: i32, %arg2: i32) -> (i32, i32) {
    %c0_i32 = arith.constant 0 : i32
    return %arg2, %arg1 : i32, i32
  }
  func.func @transform_2(%arg0: i32, %arg1: i32, %arg2: i32) -> (i32, i32) {
    %c0_i32 = arith.constant 0 : i32
    %c0_i32_0 = arith.constant 0 : i32
    return %c0_i32, %arg1 : i32, i32
  }
  func.func @transform_3(%arg0: i32, %arg1: i32, %arg2: i32) -> (i32, i32) {
    %c0_i32 = arith.constant 0 : i32
    return %arg0, %arg1 : i32, i32
  }
}

module attributes {stable_mosaic.version = 11 : i64} {
  func.func @_bn_relu_pool_kernel(%arg0: i32, %arg1: memref<24x2x2x512xbf16, #tpu.memory_space<vmem>>, %arg2: memref<1x512xf32, #tpu.memory_space<vmem>>, %arg3: memref<1x512xf32, #tpu.memory_space<vmem>>, %arg4: memref<24x2x256xbf16, #tpu.memory_space<vmem>>) attributes {dimension_semantics = [#tpu.dimension_semantics<parallel>], iteration_bounds = array<i64: 1>, scalar_prefetch = 0 : i64, scratch_operands = 0 : i64, tpu.core_type = #tpu.core_type<tc>, window_params = [{transform_indices = @transform_0, window_bounds = array<i64: 24, 2, 2, 512>}, {pipeline_mode = #tpu.pipeline_mode<synchronous>, transform_indices = @transform_1, window_bounds = array<i64: 1, 512>}, {pipeline_mode = #tpu.pipeline_mode<synchronous>, transform_indices = @transform_2, window_bounds = array<i64: 1, 512>}, {transform_indices = @transform_3, window_bounds = array<i64: 24, 2, 256>}]} {
    %c0 = arith.constant 0 : index
    %c0_0 = arith.constant 0 : index
    %c0_1 = arith.constant 0 : index
    %c0_2 = arith.constant 0 : index
    %0 = vector.load %arg1[%c0, %c0_0, %c0_1, %c0_2] : memref<24x2x2x512xbf16, #tpu.memory_space<vmem>>, vector<24x2x2x512xbf16>
    %1 = arith.extf %0 : vector<24x2x2x512xbf16> to vector<24x2x2x512xf32>
    %c0_3 = arith.constant 0 : index
    %c0_4 = arith.constant 0 : index
    %2 = vector.load %arg2[%c0_3, %c0_4] : memref<1x512xf32, #tpu.memory_space<vmem>>, vector<1x512xf32>
    %3 = vector.shape_cast %2 : vector<1x512xf32> to vector<1x1x1x512xf32>
    %4 = vector.broadcast %3 : vector<1x1x1x512xf32> to vector<24x2x2x512xf32>
    %5 = arith.mulf %1, %4 : vector<24x2x2x512xf32>
    %c0_5 = arith.constant 0 : index
    %c0_6 = arith.constant 0 : index
    %6 = vector.load %arg3[%c0_5, %c0_6] : memref<1x512xf32, #tpu.memory_space<vmem>>, vector<1x512xf32>
    %7 = vector.shape_cast %6 : vector<1x512xf32> to vector<1x1x1x512xf32>
    %8 = vector.broadcast %7 : vector<1x1x1x512xf32> to vector<24x2x2x512xf32>
    %9 = arith.addf %5, %8 : vector<24x2x2x512xf32>
    %cst = arith.constant 0.000000e+00 : f32
    %10 = vector.broadcast %cst : f32 to vector<24x2x2x512xf32>
    %11 = arith.maximumf %9, %10 : vector<24x2x2x512xf32>
    %12 = vector.extract_strided_slice %11 {offsets = [0, 0, 0, 0], sizes = [24, 1, 2, 512], strides = [1, 1, 1, 1]} : vector<24x2x2x512xf32> to vector<24x1x2x512xf32>
    %13 = vector.shape_cast %12 : vector<24x1x2x512xf32> to vector<24x2x512xf32>
    %14 = vector.extract_strided_slice %11 {offsets = [0, 1, 0, 0], sizes = [24, 1, 2, 512], strides = [1, 1, 1, 1]} : vector<24x2x2x512xf32> to vector<24x1x2x512xf32>
    %15 = vector.shape_cast %14 : vector<24x1x2x512xf32> to vector<24x2x512xf32>
    %16 = arith.maximumf %13, %15 : vector<24x2x512xf32>
    %17 = vector.extract_strided_slice %16 {offsets = [0, 0, 0], sizes = [24, 2, 256], strides = [1, 1, 1]} : vector<24x2x512xf32> to vector<24x2x256xf32>
    %18 = vector.extract_strided_slice %16 {offsets = [0, 0, 256], sizes = [24, 2, 256], strides = [1, 1, 1]} : vector<24x2x512xf32> to vector<24x2x256xf32>
    %19 = arith.maximumf %17, %18 : vector<24x2x256xf32>
    %20 = arith.truncf %19 : vector<24x2x256xf32> to vector<24x2x256xbf16>
    %c0_7 = arith.constant 0 : index
    %c0_8 = arith.constant 0 : index
    %c0_9 = arith.constant 0 : index
    %21 = vector.load %arg4[%c0_7, %c0_8, %c0_9] : memref<24x2x256xbf16, #tpu.memory_space<vmem>>, vector<24x2x256xbf16>
    tpu.vector_store %arg4[%c0_7, %c0_8, %c0_9], %20 {strides = array<i32>} : memref<24x2x256xbf16, #tpu.memory_space<vmem>>, vector<24x2x256xbf16>,
    return
  }
  func.func @transform_0(%arg0: i32) -> (i32, i32, i32, i32) {
    %c0_i32 = arith.constant 0 : i32
    %c0_i32_0 = arith.constant 0 : i32
    %c0_i32_1 = arith.constant 0 : i32
    %c0_i32_2 = arith.constant 0 : i32
    return %arg0, %c0_i32, %c0_i32_0, %c0_i32_1 : i32, i32, i32, i32
  }
  func.func @transform_1(%arg0: i32) -> (i32, i32) {
    %c0_i32 = arith.constant 0 : i32
    %c0_i32_0 = arith.constant 0 : i32
    %c0_i32_1 = arith.constant 0 : i32
    return %c0_i32, %c0_i32_0 : i32, i32
  }
  func.func @transform_2(%arg0: i32) -> (i32, i32) {
    %c0_i32 = arith.constant 0 : i32
    %c0_i32_0 = arith.constant 0 : i32
    %c0_i32_1 = arith.constant 0 : i32
    return %c0_i32, %c0_i32_0 : i32, i32
  }
  func.func @transform_3(%arg0: i32) -> (i32, i32, i32) {
    %c0_i32 = arith.constant 0 : i32
    %c0_i32_0 = arith.constant 0 : i32
    %c0_i32_1 = arith.constant 0 : i32
    return %arg0, %c0_i32, %c0_i32_0 : i32, i32, i32
  }
}

module attributes {stable_mosaic.version = 11 : i64} {
  func.func @_matmul_kernel(%arg0: i32, %arg1: i32, %arg2: i32, %arg3: memref<8x6144xbf16, #tpu.memory_space<vmem>>, %arg4: memref<6144x128xbf16, #tpu.memory_space<vmem>>, %arg5: memref<1x128xf32, #tpu.memory_space<vmem>>, %arg6: memref<8x128xf32, #tpu.memory_space<vmem>>, %arg7: memref<8x128xf32, #tpu.memory_space<vmem>>) attributes {dimension_semantics = [#tpu.dimension_semantics<parallel>, #tpu.dimension_semantics<parallel>, #tpu.dimension_semantics<arbitrary>], iteration_bounds = array<i64: 1, 1, 1>, scalar_prefetch = 0 : i64, scratch_operands = 1 : i64, tpu.core_type = #tpu.core_type<tc>, window_params = [{transform_indices = @transform_0, window_bounds = array<i64: 8, 6144>}, {transform_indices = @transform_1, window_bounds = array<i64: 6144, 128>}, {transform_indices = @transform_2, window_bounds = array<i64: 1, 128>}, {transform_indices = @transform_3, window_bounds = array<i64: 8, 128>}]} {
    %c0_i32 = arith.constant 0 : i32
    %0 = arith.cmpi eq, %arg2, %c0_i32 : i32
    %1 = arith.extui %0 : i1 to i32
    %c0_i32_0 = arith.constant 0 : i32
    %2 = arith.cmpi ne, %1, %c0_i32_0 : i32
    scf.if %2 {
      %cst_10 = arith.constant 0.000000e+00 : f32
      %12 = vector.broadcast %cst_10 : f32 to vector<8x128xf32>
      %c0_11 = arith.constant 0 : index
      %c0_12 = arith.constant 0 : index
      %13 = vector.load %arg7[%c0_11, %c0_12] : memref<8x128xf32, #tpu.memory_space<vmem>>, vector<8x128xf32>
      tpu.vector_store %arg7[%c0_11, %c0_12], %12 {strides = array<i32>} : memref<8x128xf32, #tpu.memory_space<vmem>>, vector<8x128xf32>,
    } else {
    }
    %c0 = arith.constant 0 : index
    %c0_1 = arith.constant 0 : index
    %3 = vector.load %arg7[%c0, %c0_1] : memref<8x128xf32, #tpu.memory_space<vmem>>, vector<8x128xf32>
    %c0_2 = arith.constant 0 : index
    %c0_3 = arith.constant 0 : index
    %4 = vector.load %arg3[%c0_2, %c0_3] : memref<8x6144xbf16, #tpu.memory_space<vmem>>, vector<8x6144xbf16>
    %c0_4 = arith.constant 0 : index
    %c0_5 = arith.constant 0 : index
    %5 = vector.load %arg4[%c0_4, %c0_5] : memref<6144x128xbf16, #tpu.memory_space<vmem>>, vector<6144x128xbf16>
    %cst = arith.constant dense<0.000000e+00> : vector<8x128xf32>
    %6 = tpu.matmul %4, %5, %cst {dimension_numbers = #tpu.dot_dimension_numbers<[1], [0], [0], [1], [0, 0, 1, 1], [], []>} : vector<8x6144xbf16>, vector<6144x128xbf16>, vector<8x128xf32> -> vector<8x128xf32>
    %7 = arith.addf %3, %6 : vector<8x128xf32>
    %c0_6 = arith.constant 0 : index
    %c0_7 = arith.constant 0 : index
    %8 = vector.load %arg7[%c0_6, %c0_7] : memref<8x128xf32, #tpu.memory_space<vmem>>, vector<8x128xf32>
    tpu.vector_store %arg7[%c0_6, %c0_7], %7 {strides = array<i32>} : memref<8x128xf32, #tpu.memory_space<vmem>>, vector<8x128xf32>,
    %c0_i32_8 = arith.constant 0 : i32
    %9 = arith.cmpi eq, %arg2, %c0_i32_8 : i32
    %10 = arith.extui %9 : i1 to i32
    %c0_i32_9 = arith.constant 0 : i32
    %11 = arith.cmpi ne, %10, %c0_i32_9 : i32
    scf.if %11 {
      %c0_10 = arith.constant 0 : index
      %c0_11 = arith.constant 0 : index
      %12 = vector.load %arg7[%c0_10, %c0_11] : memref<8x128xf32, #tpu.memory_space<vmem>>, vector<8x128xf32>
      %c0_12 = arith.constant 0 : index
      %c0_13 = arith.constant 0 : index
      %13 = vector.load %arg5[%c0_12, %c0_13] : memref<1x128xf32, #tpu.memory_space<vmem>>, vector<1x128xf32>
      %14 = vector.broadcast %13 : vector<1x128xf32> to vector<8x128xf32>
      %15 = arith.addf %12, %14 : vector<8x128xf32>
      %16 = math.tanh %15 : vector<8x128xf32>
      %c0_14 = arith.constant 0 : index
      %c0_15 = arith.constant 0 : index
      %17 = vector.load %arg6[%c0_14, %c0_15] : memref<8x128xf32, #tpu.memory_space<vmem>>, vector<8x128xf32>
      tpu.vector_store %arg6[%c0_14, %c0_15], %16 {strides = array<i32>} : memref<8x128xf32, #tpu.memory_space<vmem>>, vector<8x128xf32>,
    } else {
    }
    return
  }
  func.func @transform_0(%arg0: i32, %arg1: i32, %arg2: i32) -> (i32, i32) {
    %c0_i32 = arith.constant 0 : i32
    return %arg0, %arg2 : i32, i32
  }
  func.func @transform_1(%arg0: i32, %arg1: i32, %arg2: i32) -> (i32, i32) {
    %c0_i32 = arith.constant 0 : i32
    return %arg2, %arg1 : i32, i32
  }
  func.func @transform_2(%arg0: i32, %arg1: i32, %arg2: i32) -> (i32, i32) {
    %c0_i32 = arith.constant 0 : i32
    %c0_i32_0 = arith.constant 0 : i32
    return %c0_i32, %arg1 : i32, i32
  }
  func.func @transform_3(%arg0: i32, %arg1: i32, %arg2: i32) -> (i32, i32) {
    %c0_i32 = arith.constant 0 : i32
    return %arg0, %arg1 : i32, i32
  }
}

</mosaic_0001>

<bundles_post_ra>
// kernel: tile.18
= control target key start
LH: loop header
LB: loop body
LE: loop exit
PB: predicated region body
PF: predicated region fallthrough
CT: control target
= control target key end

     0   :  { %s38_s0 = inlined_call_operand.<no memory space> [shape: f32[], index: 0, kind: input, shape index: {}]   ;;  %s39_s1 = inlined_call_operand.vmem [shape: f32[1,512], index: 1, kind: output, shape index: {}]  }
   0x1   :  { %v2_v0 = vstv %s38_s0 }
   0x2   :  { %3 = vst [vmem:[%s39_s1] sm:$0x1] %v2_v0 }
   0x3   :  { %10 = vst [vmem:[%s39_s1 + $0x1] sm:$0x1] %v2_v0 }
   0x4   :  { %11 = vst [vmem:[%s39_s1 + $0x2] sm:$0x1] %v2_v0 }
   0x5   :  { %12 = vst [vmem:[%s39_s1 + $0x3] sm:$0x1] %v2_v0 }

</bundles_post_ra>
